<compile_context>
chip_gen: v5e
topology: v5e:2x2
jax: 0.10.0
libtpu: 0.0.40
codegen_flags: <defaults>
</compile_context>

<pallas_src>
import jax
import jax.numpy as jnp
from jax import lax
from jax.experimental import pallas as pl
from jax.experimental.pallas import tpu as pltpu


def _classifier_kernel(x_ref, w_ref, b_ref, o_ref):
    # x_ref : (TB, H*W, C)  native dtype (f32 or bf16), VMEM
    # w_ref : (NCpad, C)    float32 (PyTorch nn.Linear layout, rows = classes)
    # b_ref : (1, NCpad)    float32
    # o_ref : (TB, NCpad)   float32
    x = x_ref[...].astype(jnp.float32)
    # global average pool over the spatial (second-minor) axis -> (TB, C), C on lanes
    pooled = jnp.sum(x, axis=1) * (1.0 / x.shape[1])
    # linear layer: contract on C of both operands (no host-side weight transpose)
    out = lax.dot_general(
        pooled,
        w_ref[...],
        dimension_numbers=(((1,), (1,)), ((), ())),
        preferred_element_type=jnp.float32,
    )
    o_ref[...] = out + b_ref[...]


def classifier_module_forward(x_list, w_linear, b_linear,
                              *, tile_bytes_budget=2 * 1024 * 1024):
    """x_list: list of NCHW feature maps (only x[-1] is consumed, as in PyTorch).
    w_linear: (num_classes, channel)  -- PyTorch nn.Linear weight layout.
    b_linear: (num_classes,)
    Returns (B, num_classes) float32.
    """
    x = x_list[-1]                          # x[-1] in the PyTorch forward
    B, C, H, W = x.shape
    NC = w_linear.shape[0]
    HW = H * W

    # Put channels on the lane axis: (B, H*W, C). Keep the native dtype (no host
    # f32 cast of the big feature map).
    x_nlc = jnp.transpose(x, (0, 2, 3, 1)).reshape(B, HW, C)

    # Pad the class dimension to a lane-dense multiple of 128; slice back at the end.
    NCP = ((NC + 127) // 128) * 128
    w_pad = jnp.zeros((NCP, C), jnp.float32).at[:NC, :].set(
        w_linear.astype(jnp.float32))
    b_pad = jnp.zeros((1, NCP), jnp.float32).at[0, :NC].set(
        b_linear.astype(jnp.float32))

    # Batch tile size: keep a double-buffered input tile comfortably inside the
    # scoped VMEM budget on all generations (v5e 16MiB / v6e 32MiB / v7x 32MiB).
    itemsize = jnp.dtype(x.dtype).itemsize
    lane_c = ((C + 127) // 128) * 128
    sub_hw = ((HW + 7) // 8) * 8
    bytes_per_sample = sub_hw * lane_c * itemsize
    tb = min(B, max(1, tile_bytes_budget // bytes_per_sample))
    if tb < B:
        # second-minor dim of the output block must be a multiple of 8 when tiled
        tb = min(B, max(8, (tb // 8) * 8))
    grid = (pl.cdiv(B, tb),)

    cost = pl.CostEstimate(
        flops=B * C * HW + 2 * B * C * NCP,
        transcendentals=0,
        bytes_accessed=(x_nlc.size * itemsize
                        + w_pad.size * 4 + b_pad.size * 4 + B * NCP * 4),
    )

    out_pad = pl.pallas_call(
        _classifier_kernel,
        out_shape=jax.ShapeDtypeStruct((B, NCP), jnp.float32),
        grid=grid,
        in_specs=[
            pl.BlockSpec((tb, HW, C), lambda i: (i, 0, 0)),
            pl.BlockSpec((NCP, C), lambda i: (0, 0)),
            pl.BlockSpec((1, NCP), lambda i: (0, 0)),
        ],
        out_specs=pl.BlockSpec((tb, NCP), lambda i: (i, 0)),
        compiler_params=pltpu.CompilerParams(
            dimension_semantics=("parallel",),
            vmem_limit_bytes=32 * 1024 * 1024,
        ),
        cost_estimate=cost,
    )(x_nlc, w_pad, b_pad)

    return out_pad[:, :NC]


if __name__ == "__main__":
    # Small shapes consistent with the module: batch=2, channel=4, spatial=16,
    # num_classes=10.
    B, C, H, W = 2, 4, 16, 16
    NC = 10

    key = jax.random.PRNGKey(0)
    k_x0, k_x1, k_w, k_b = jax.random.split(key, 4)

    # Multi-scale input list (only x[-1] is consumed, as in the PyTorch forward).
    x0 = jax.random.normal(k_x0, (B, C, 2 * H, 2 * W), dtype=jnp.float32)
    x1 = jax.random.normal(k_x1, (B, C, H, W), dtype=jnp.float32)
    x_list = [x0, x1]

    # Deterministic Linear params, PyTorch-style uniform(-1/sqrt(C), 1/sqrt(C)).
    bound = 1.0 / (C ** 0.5)
    w_linear = jax.random.uniform(k_w, (NC, C), minval=-bound, maxval=bound,
                                  dtype=jnp.float32)
    b_linear = jax.random.uniform(k_b, (NC,), minval=-bound, maxval=bound,
                                  dtype=jnp.float32)

    out = classifier_module_forward(x_list, w_linear, b_linear)
    out = jax.block_until_ready(out)

    # Pure-JAX reference check of the same semantics.
    ref = jnp.mean(x_list[-1].astype(jnp.float32), axis=(2, 3)) @ w_linear.T + b_linear
    assert out.shape == (B, NC)
    assert jnp.allclose(out, ref, atol=1e-5, rtol=1e-5)

    print("KERNEL_OK")
</pallas_src>

<mosaic_0001>
module attributes {stable_mosaic.version = 11 : i64} {
  func.func @_classifier_kernel(%arg0: i32, %arg1: memref<2x256x4xf32, #tpu.memory_space<vmem>>, %arg2: memref<128x4xf32, #tpu.memory_space<vmem>>, %arg3: memref<1x128xf32, #tpu.memory_space<vmem>>, %arg4: memref<2x128xf32, #tpu.memory_space<vmem>>) attributes {dimension_semantics = [#tpu.dimension_semantics<parallel>], iteration_bounds = array<i64: 1>, scalar_prefetch = 0 : i64, scratch_operands = 0 : i64, tpu.core_type = #tpu.core_type<tc>, window_params = [{transform_indices = @transform_0, window_bounds = array<i64: 2, 256, 4>}, {pipeline_mode = #tpu.pipeline_mode<synchronous>, transform_indices = @transform_1, window_bounds = array<i64: 128, 4>}, {pipeline_mode = #tpu.pipeline_mode<synchronous>, transform_indices = @transform_2, window_bounds = array<i64: 1, 128>}, {transform_indices = @transform_3, window_bounds = array<i64: 2, 128>}]} {
    %c0 = arith.constant 0 : index
    %c0_0 = arith.constant 0 : index
    %c0_1 = arith.constant 0 : index
    %0 = vector.load %arg1[%c0, %c0_0, %c0_1] : memref<2x256x4xf32, #tpu.memory_space<vmem>>, vector<2x256x4xf32>
    %cst = arith.constant dense<0.000000e+00> : vector<2x4xf32>
    %1 = vector.multi_reduction <add>, %0, %cst [1] : vector<2x256x4xf32> to vector<2x4xf32>
    %cst_2 = arith.constant 3.906250e-03 : f32
    %2 = vector.broadcast %cst_2 : f32 to vector<2x4xf32>
    %3 = arith.mulf %1, %2 : vector<2x4xf32>
    %c0_3 = arith.constant 0 : index
    %c0_4 = arith.constant 0 : index
    %4 = vector.load %arg2[%c0_3, %c0_4] : memref<128x4xf32, #tpu.memory_space<vmem>>, vector<128x4xf32>
    %cst_5 = arith.constant dense<0.000000e+00> : vector<2x128xf32>
    %5 = tpu.matmul %3, %4, %cst_5 {dimension_numbers = #tpu.dot_dimension_numbers<[1], [1], [0], [0], [0, 0, 1, 0], [], []>} : vector<2x4xf32>, vector<128x4xf32>, vector<2x128xf32> -> vector<2x128xf32>
    %c0_6 = arith.constant 0 : index
    %c0_7 = arith.constant 0 : index
    %6 = vector.load %arg3[%c0_6, %c0_7] : memref<1x128xf32, #tpu.memory_space<vmem>>, vector<1x128xf32>
    %7 = vector.broadcast %6 : vector<1x128xf32> to vector<2x128xf32>
    %8 = arith.addf %5, %7 : vector<2x128xf32>
    %c0_8 = arith.constant 0 : index
    %c0_9 = arith.constant 0 : index
    %9 = vector.load %arg4[%c0_8, %c0_9] : memref<2x128xf32, #tpu.memory_space<vmem>>, vector<2x128xf32>
    tpu.vector_store %arg4[%c0_8, %c0_9], %8 {strides = array<i32>} : memref<2x128xf32, #tpu.memory_space<vmem>>, vector<2x128xf32>,
    return
  }
  func.func @transform_0(%arg0: i32) -> (i32, i32, i32) {
    %c0_i32 = arith.constant 0 : i32
    %c0_i32_0 = arith.constant 0 : i32
    %c0_i32_1 = arith.constant 0 : i32
    return %arg0, %c0_i32, %c0_i32_0 : i32, i32, i32
  }
  func.func @transform_1(%arg0: i32) -> (i32, i32) {
    %c0_i32 = arith.constant 0 : i32
    %c0_i32_0 = arith.constant 0 : i32
    %c0_i32_1 = arith.constant 0 : i32
    return %c0_i32, %c0_i32_0 : i32, i32
  }
  func.func @transform_2(%arg0: i32) -> (i32, i32) {
    %c0_i32 = arith.constant 0 : i32
    %c0_i32_0 = arith.constant 0 : i32
    %c0_i32_1 = arith.constant 0 : i32
    return %c0_i32, %c0_i32_0 : i32, i32
  }
  func.func @transform_3(%arg0: i32) -> (i32, i32) {
    %c0_i32 = arith.constant 0 : i32
    %c0_i32_0 = arith.constant 0 : i32
    return %arg0, %c0_i32 : i32, i32
  }
}

</mosaic_0001>

<bundles_post_ra>
// kernel: tpu_custom_call.1
= control target key start
LH: loop header
LB: loop body
LE: loop exit
PB: predicated region body
PF: predicated region fallthrough
CT: control target
= control target key end

     0   :  { %vm79_vm0 = vcmask 31744   ;;  %s724_s0 = inlined_call_operand.vmem [shape: f32[2,256,4], index: 0, kind: input, shape index: {}]   ;;  %s725_s1 = inlined_call_operand.vmem [shape: f32[128,4], index: 1, kind: input, shape index: {}]   ;;  %s726_s2 = inlined_call_operand.vmem [shape: f32[1,128], index: 2, kind: input, shape index: {}]   ;;  %s727_s3 = inlined_call_operand.hbm [shape: f32[2,128], index: 3, kind: output, shape index: {}]  }
   0x1   :  { %v235_v0 = vld [vmem:[%s725_s1 + $0x78] sm:$0xff]  ;;  %v234_v1 = vld [vmem:[%s725_s1 + $0x70] sm:$0xff]  ;;  %v15_v2 = vld [vmem:[%s724_s0] sm:$0xff] }
   0x2   :  { %331 = vmatpush.xpose.msk.msra.mxu0 %vm79_vm0, %v235_v0  ;;  %v16_v3 = vld [vmem:[%s724_s0 + $0x8] sm:$0xff]  ;;  %v17_v4 = vld [vmem:[%s724_s0 + $0x10] sm:$0xff]  ;;  %v18_v5 = vld [vmem:[%s724_s0 + $0x18] sm:$0xff]  ;;  %v80_v6 = vsel %vm79_vm0, %v15_v2, 0.0 }
   0x3   :  { %v81_v7 = vsel %vm79_vm0, %v16_v3, 0.0  ;;  %v19_v8 = vld [vmem:[%s724_s0 + $0x20] sm:$0xff]  ;;  %v83_v10 = vsel %vm79_vm0, %v17_v4, 0.0  ;;  %v233_v11 = vld [vmem:[%s725_s1 + $0x68] sm:$0xff]  ;;  %v85_v12 = vsel %vm79_vm0, %v18_v5, 0.0  ;;  %v21_v16 = vld [vmem:[%s724_s0 + $0x30] sm:$0xff] }
   0x4   :  { %v82_v9 = vadd.f32 %v81_v7, %v80_v6  ;;  %v20_v13 = vld [vmem:[%s724_s0 + $0x28] sm:$0xff]  ;;  %v87_v15 = vsel %vm79_vm0, %v19_v8, 0.0  ;;  %v232_v18 = vld [vmem:[%s725_s1 + $0x60] sm:$0xff]  ;;  %v22_v20 = vld [vmem:[%s724_s0 + $0x38] sm:$0xff]  ;;  %v91_v26 = vsel %vm79_vm0, %v21_v16, 0.0 }
   0x5   :  { %v89_v19 = vsel %vm79_vm0, %v20_v13, 0.0  ;;  %v47_v21 = vld [vmem:[%s724_s0 + $0x100] sm:$0xff]  ;;  %v48_v22 = vld [vmem:[%s724_s0 + $0x108] sm:$0xff]  ;;  %v49_v24 = vld [vmem:[%s724_s0 + $0x110] sm:$0xff]  ;;  %v93_v35 = vsel %vm79_vm0, %v22_v20, 0.0 }
   0x6   :  { %332 = vmatpush.xpose.msk.msra.mxu0 %vm79_vm0, %v234_v1  ;;  %v84_v14 = vadd.f32 %v83_v10, %v82_v9  ;;  %v50_v25 = vld [vmem:[%s724_s0 + $0x118] sm:$0xff]  ;;  %v149_v27 = vsel %vm79_vm0, %v47_v21, 0.0  ;;  %v150_v28 = vsel %vm79_vm0, %v48_v22, 0.0  ;;  %v23_v29 = vld [vmem:[%s724_s0 + $0x40] sm:$0xff]  ;;  %v152_v33 = vsel %vm79_vm0, %v49_v24, 0.0  ;;  %v24_v37 = vld [vmem:[%s724_s0 + $0x48] sm:$0xff] }
   0x7   :  { %v51_v30 = vld [vmem:[%s724_s0 + $0x120] sm:$0xff]  ;;  %v151_v32 = vadd.f32 %v150_v28, %v149_v27  ;;  %v231_v34 = vld [vmem:[%s725_s1 + $0x58] sm:$0xff]  ;;  %v154_v36 = vsel %vm79_vm0, %v50_v25, 0.0  ;;  %v52_v38 = vld [vmem:[%s724_s0 + $0x128] sm:$0xff]  ;;  %v95_v41 = vsel %vm79_vm0, %v23_v29, 0.0  ;;  %v97_v48 = vsel %vm79_vm0, %v24_v37, 0.0 }
   0x8   :  { %v86_v17 = vadd.f32 %v85_v12, %v84_v14  ;;  %v156_v42 = vsel %vm79_vm0, %v51_v30, 0.0  ;;  %v25_v43 = vld [vmem:[%s724_s0 + $0x50] sm:$0xff]  ;;  %v158_v49 = vsel %vm79_vm0, %v52_v38, 0.0  ;;  %v26_v50 = vld [vmem:[%s724_s0 + $0x58] sm:$0xff]  ;;  %v229_v56 = vld [vmem:[%s725_s1 + $0x48] sm:$0xff] }
   0x9   :  { %v153_v40 = vadd.f32 %v152_v33, %v151_v32  ;;  %v53_v44 = vld [vmem:[%s724_s0 + $0x130] sm:$0xff]  ;;  %v54_v51 = vld [vmem:[%s724_s0 + $0x138] sm:$0xff]  ;;  %v99_v54 = vsel %vm79_vm0, %v25_v43, 0.0  ;;  %v27_v57 = vld [vmem:[%s724_s0 + $0x60] sm:$0xff]  ;;  %v101_v61 = vsel %vm79_vm0, %v26_v50, 0.0 }
   0xa   :  { %333 = vmatpush.xpose.msk.msra.mxu0 %vm79_vm0, %v233_v11  ;;  %v88_v23 = vadd.f32 %v87_v15, %v86_v17  ;;  %v230_v47 = vld [vmem:[%s725_s1 + $0x50] sm:$0xff]  ;;  %v160_v55 = vsel %vm79_vm0, %v53_v44, 0.0  ;;  %v55_v58 = vld [vmem:[%s724_s0 + $0x140] sm:$0xff]  ;;  %v162_v62 = vsel %vm79_vm0, %v54_v51, 0.0 }
   0xb   :  { %v155_v46 = vadd.f32 %v154_v36, %v153_v40 }
   0xc   :  { %v90_v31 = vadd.f32 %v89_v19, %v88_v23 }
   0xd   :  { %v157_v53 = vadd.f32 %v156_v42, %v155_v46 }
   0xe   :  { %334 = vmatpush.xpose.msk.msra.mxu0 %vm79_vm0, %v232_v18  ;;  %v92_v39 = vadd.f32 %v91_v26, %v90_v31 }
   0xf   :  { %v159_v60 = vadd.f32 %v158_v49, %v157_v53 }
  0x10   :  { %v94_v45 = vadd.f32 %v93_v35, %v92_v39 }
  0x12   :  { %335 = vmatpush.xpose.msk.msra.mxu0 %vm79_vm0, %v231_v34  ;;  %v96_v52 = vadd.f32 %v95_v41, %v94_v45 }
  0x14   :  { %v98_v59 = vadd.f32 %v97_v48, %v96_v52 }
  0x16   :  { %336 = vmatpush.xpose.msk.msra.mxu0 %vm79_vm0, %v230_v47 }
  0x17   :  { %8 = vsyncpa [#allocation3], 0  ;;  %v28_v63 = vld [vmem:[%s724_s0 + $0x68] sm:$0xff]  ;;  %v100_v0 = vadd.f32 %v99_v54, %v98_v59  ;;  %v161_v1 = vadd.f32 %v160_v55, %v159_v60  ;;  %v103_v3 = vsel %vm79_vm0, %v27_v57, 0.0  ;;  %v164_v4 = vsel %vm79_vm0, %v55_v58, 0.0  ;;  %v29_v5 = vld [vmem:[%s724_s0 + $0x70] sm:$0xff] }
  0x18   :  { %v56_v2 = vld [vmem:[%s724_s0 + $0x148] sm:$0xff]  ;;  %v228_v8 = vld [vmem:[%s725_s1 + $0x40] sm:$0xff]  ;;  %v57_v9 = vld [vmem:[%s724_s0 + $0x150] sm:$0xff]  ;;  %v105_v10 = vsel %vm79_vm0, %v28_v63, 0.0  ;;  %v107_v16 = vsel %vm79_vm0, %v29_v5, 0.0  ;;  %vm242_vm1 = vcmask 1041409  }
  0x19   :  { %v102_v6 = vadd.f32 %v101_v61, %v100_v0  ;;  %v163_v7 = vadd.f32 %v162_v62, %v161_v1  ;;  %v30_v11 = vld [vmem:[%s724_s0 + $0x78] sm:$0xff]  ;;  %v166_v14 = vsel %vm79_vm0, %v56_v2, 0.0  ;;  %v31_v17 = vld [vmem:[%s724_s0 + $0x80] sm:$0xff]  ;;  %v168_v19 = vsel %vm79_vm0, %v57_v9, 0.0  ;;  %v32_v24 = vld [vmem:[%s724_s0 + $0x88] sm:$0xff]  ;;  %s376_s10 = smov [#allocation2]  }
  0x1a   :  { %337 = vmatpush.xpose.msk.msra.mxu0 %vm79_vm0, %v229_v56  ;;  %v58_v15 = vld [vmem:[%s724_s0 + $0x158] sm:$0xff]  ;;  %v59_v21 = vld [vmem:[%s724_s0 + $0x160] sm:$0xff]  ;;  %v109_v22 = vsel %vm79_vm0, %v30_v11, 0.0  ;;  %v60_v27 = vld [vmem:[%s724_s0 + $0x168] sm:$0xff]  ;;  %v111_v28 = vsel %vm79_vm0, %v31_v17, 0.0  ;;  %v113_v35 = vsel %vm79_vm0, %v32_v24, 0.0 }
  0x1b   :  { %v104_v12 = vadd.f32 %v103_v3, %v102_v6  ;;  %v165_v13 = vadd.f32 %v164_v4, %v163_v7  ;;  %v227_v20 = vld [vmem:[%s725_s1 + $0x38] sm:$0xff]  ;;  %v170_v26 = vsel %vm79_vm0, %v58_v15, 0.0  ;;  %v33_v30 = vld [vmem:[%s724_s0 + $0x90] sm:$0xff]  ;;  %v172_v32 = vsel %vm79_vm0, %v59_v21, 0.0  ;;  %v35_v43 = vld [vmem:[%s724_s0 + $0xa0] sm:$0xff]  ;;  %s320_s11 = sshll.u32 %s376_s10, 4  ;;  %s321_s11 = int_to_ptr.vmem [resolvable:$true] %s320_s11 }
  0x1c   :  { %v226_v33 = vld [vmem:[%s725_s1 + $0x30] sm:$0xff]  ;;  %v34_v37 = vld [vmem:[%s724_s0 + $0x98] sm:$0xff]  ;;  %v174_v39 = vsel %vm79_vm0, %v60_v27, 0.0  ;;  %v115_v41 = vsel %vm79_vm0, %v33_v30, 0.0  ;;  %v225_v46 = vld [vmem:[%s725_s1 + $0x28] sm:$0xff]  ;;  %v119_v54 = vsel %vm79_vm0, %v35_v43, 0.0 }
  0x1d   :  { %v106_v18 = vadd.f32 %v105_v10, %v104_v12  ;;  %v167_v23 = vadd.f32 %v166_v14, %v165_v13  ;;  %v61_v34 = vld [vmem:[%s724_s0 + $0x170] sm:$0xff]  ;;  %v62_v40 = vld [vmem:[%s724_s0 + $0x178] sm:$0xff]  ;;  %v63_v47 = vld [vmem:[%s724_s0 + $0x180] sm:$0xff]  ;;  %v117_v48 = vsel %vm79_vm0, %v34_v37, 0.0  ;;  %s322_s14 = sshll.u32 %s727_s3, 4  ;;  %s323_s14 = int_to_ptr.hbm [resolvable:$true] %s322_s14 }
  0x1e   :  { %338 = vmatpush.xpose.msk.msra.mxu0 %vm79_vm0, %v228_v8  ;;  %v176_v45 = vsel %vm79_vm0, %v61_v34, 0.0  ;;  %v36_v50 = vld [vmem:[%s724_s0 + $0xa8] sm:$0xff]  ;;  %v178_v52 = vsel %vm79_vm0, %v62_v40, 0.0  ;;  %v37_v56 = vld [vmem:[%s724_s0 + $0xb0] sm:$0xff]  ;;  %v180_v58 = vsel %vm79_vm0, %v63_v47, 0.0  ;;  %v224_v59 = vld [vmem:[%s725_s1 + $0x20] sm:$0xff] }
  0x1f   :  { %v108_v25 = vadd.f32 %v107_v16, %v106_v18  ;;  %v169_v29 = vadd.f32 %v168_v19, %v167_v23  ;;  %v64_v53 = vld [vmem:[%s724_s0 + $0x188] sm:$0xff]  ;;  %v65_v60 = vld [vmem:[%s724_s0 + $0x190] sm:$0xff]  ;;  %v121_v61 = vsel %vm79_vm0, %v36_v50, 0.0  ;;  %v38_v63 = vld [vmem:[%s724_s0 + $0xb8] sm:$0xff]  ;;  %v123_v3 = vsel %vm79_vm0, %v37_v56, 0.0 }
  0x20   :  { %v182_v1 = vsel %vm79_vm0, %v64_v53, 0.0  ;;  %v66_v2 = vld [vmem:[%s724_s0 + $0x198] sm:$0xff]  ;;  %v39_v5 = vld [vmem:[%s724_s0 + $0xc0] sm:$0xff]  ;;  %v184_v7 = vsel %vm79_vm0, %v65_v60, 0.0  ;;  %v125_v10 = vsel %vm79_vm0, %v38_v63, 0.0  ;;  %v40_v12 = vld [vmem:[%s724_s0 + $0xc8] sm:$0xff] }
  0x21   :  { %v110_v31 = vadd.f32 %v109_v22, %v108_v25  ;;  %v171_v36 = vadd.f32 %v170_v26, %v169_v29  ;;  %v223_v8 = vld [vmem:[%s725_s1 + $0x18] sm:$0xff]  ;;  %v67_v9 = vld [vmem:[%s724_s0 + $0x1a0] sm:$0xff]  ;;  %v186_v14 = vsel %vm79_vm0, %v66_v2, 0.0  ;;  %v68_v15 = vld [vmem:[%s724_s0 + $0x1a8] sm:$0xff]  ;;  %v127_v16 = vsel %vm79_vm0, %v39_v5, 0.0 }
  0x22   :  { %339 = vmatpush.xpose.msk.msra.mxu0 %vm79_vm0, %v227_v20  ;;  %v41_v18 = vld [vmem:[%s724_s0 + $0xd0] sm:$0xff]  ;;  %v188_v20 = vsel %vm79_vm0, %v67_v9, 0.0  ;;  %v129_v23 = vsel %vm79_vm0, %v40_v12, 0.0  ;;  %v42_v25 = vld [vmem:[%s724_s0 + $0xd8] sm:$0xff]  ;;  %v190_v27 = vsel %vm79_vm0, %v68_v15, 0.0  ;;  %v221_v34 = vld [vmem:[%s725_s1 + $0x8] sm:$0xff] }
  0x23   :  { %v112_v38 = vadd.f32 %v111_v28, %v110_v31  ;;  %v173_v42 = vadd.f32 %v172_v32, %v171_v36  ;;  %v222_v21 = vld [vmem:[%s725_s1 + $0x10] sm:$0xff]  ;;  %v70_v28 = vld [vmem:[%s724_s0 + $0x1b8] sm:$0xff]  ;;  %v131_v29 = vsel %vm79_vm0, %v41_v18, 0.0  ;;  %v43_v31 = vld [vmem:[%s724_s0 + $0xe0] sm:$0xff]  ;;  %v133_v36 = vsel %vm79_vm0, %v42_v25, 0.0 }
  0x24   :  { %v69_v22 = vld [vmem:[%s724_s0 + $0x1b0] sm:$0xff]  ;;  %v194_v40 = vsel %vm79_vm0, %v70_v28, 0.0  ;;  %v220_v47 = vld [vmem:[%s725_s1] sm:$0xff] }
  0x25   :  { %v114_v44 = vadd.f32 %v113_v35, %v112_v38  ;;  %v175_v49 = vadd.f32 %v174_v39, %v173_v42  ;;  %v71_v35 = vld [vmem:[%s724_s0 + $0x1c0] sm:$0xff]  ;;  %v44_v38 = vld [vmem:[%s724_s0 + $0xe8] sm:$0xff]  ;;  %v135_v42 = vsel %vm79_vm0, %v43_v31, 0.0 }
  0x26   :  { %340 = vmatpush.xpose.msk.msra.mxu0 %vm79_vm0, %v226_v33  ;;  %v192_v33 = vsel %vm79_vm0, %v69_v22, 0.0 }
  0x27   :  { %v116_v51 = vadd.f32 %v115_v41, %v114_v44  ;;  %v177_v55 = vadd.f32 %v176_v45, %v175_v49  ;;  %v72_v41 = vld [vmem:[%s724_s0 + $0x1c8] sm:$0xff]  ;;  %v45_v44 = vld [vmem:[%s724_s0 + $0xf0] sm:$0xff]  ;;  %v137_v49 = vsel %vm79_vm0, %v44_v38, 0.0 }
  0x28   :  { %v198_v53 = vsel %vm79_vm0, %v72_v41, 0.0 }
  0x29   :  { %v118_v57 = vadd.f32 %v117_v48, %v116_v51  ;;  %v179_v62 = vadd.f32 %v178_v52, %v177_v55  ;;  %v73_v48 = vld [vmem:[%s724_s0 + $0x1d0] sm:$0xff]  ;;  %v46_v51 = vld [vmem:[%s724_s0 + $0xf8] sm:$0xff]  ;;  %v139_v55 = vsel %vm79_vm0, %v45_v44, 0.0 }
  0x2a   :  { %341 = vmatpush.xpose.msk.msra.mxu0 %vm79_vm0, %v225_v46  ;;  %v196_v46 = vsel %vm79_vm0, %v71_v35, 0.0  ;;  %v141_v60 = vsel %vm79_vm0, %v46_v51, 0.0 }
  0x2b   :  { %v120_v0 = vadd.f32 %v119_v54, %v118_v57  ;;  %v181_v4 = vadd.f32 %v180_v58, %v179_v62  ;;  %v74_v54 = vld [vmem:[%s724_s0 + $0x1d8] sm:$0xff]  ;;  %v200_v58 = vsel %vm79_vm0, %v73_v48, 0.0 }
  0x2c   :  { %v202_v63 = vsel %vm79_vm0, %v74_v54, 0.0 }
  0x2d   :  { %v122_v6 = vadd.f32 %v121_v61, %v120_v0  ;;  %v183_v11 = vadd.f32 %v182_v1, %v181_v4  ;;  %v76_v0 = vld [vmem:[%s724_s0 + $0x1e8] sm:$0xff]  ;;  %v77_v4 = vld [vmem:[%s724_s0 + $0x1f0] sm:$0xff] }
  0x2e   :  { %342 = vmatpush.xpose.msk.msra.mxu0 %vm79_vm0, %v224_v59  ;;  %v75_v59 = vld [vmem:[%s724_s0 + $0x1e0] sm:$0xff] }
  0x2f   :  { %v124_v13 = vadd.f32 %v123_v3, %v122_v6  ;;  %v185_v17 = vadd.f32 %v184_v7, %v183_v11  ;;  %v204_v3 = vsel %vm79_vm0, %v75_v59, 0.0  ;;  %v206_v7 = vsel %vm79_vm0, %v76_v0, 0.0 }
  0x30   :  { %v208_v11 = vsel %vm79_vm0, %v77_v4, 0.0 }
  0x31   :  { %v126_v19 = vadd.f32 %v125_v10, %v124_v13  ;;  %v187_v24 = vadd.f32 %v186_v14, %v185_v17 }
  0x32   :  { %343 = vmatpush.xpose.msk.msra.mxu0 %vm79_vm0, %v223_v8  ;;  %v78_v8 = vld [vmem:[%s724_s0 + $0x1f8] sm:$0xff] }
  0x33   :  { %v128_v26 = vadd.f32 %v127_v16, %v126_v19  ;;  %v189_v30 = vadd.f32 %v188_v20, %v187_v24  ;;  %v210_v14 = vsel %vm79_vm0, %v78_v8, 0.0 }
  0x35   :  { %v130_v32 = vadd.f32 %v129_v23, %v128_v26  ;;  %v191_v37 = vadd.f32 %v190_v27, %v189_v30 }
  0x36   :  { %344 = vmatpush.xpose.msk.msra.mxu0 %vm79_vm0, %v222_v21 }
  0x37   :  { %v132_v39 = vadd.f32 %v131_v29, %v130_v32  ;;  %v193_v43 = vadd.f32 %v192_v33, %v191_v37  ;;  %v349_v29 = vld [vmem:[%s726_s2] ss:$0 sm:$0xff] }
  0x39   :  { %v134_v45 = vadd.f32 %v133_v36, %v132_v39  ;;  %v195_v50 = vadd.f32 %v194_v40, %v193_v43 }
  0x3a   :  { %345 = vmatpush.xpose.msk.msra.mxu0 %vm79_vm0, %v221_v34 }
  0x3b   :  { %v136_v52 = vadd.f32 %v135_v42, %v134_v45  ;;  %v197_v56 = vadd.f32 %v196_v46, %v195_v50 }
  0x3d   :  { %v138_v57 = vadd.f32 %v137_v49, %v136_v52  ;;  %v199_v61 = vadd.f32 %v198_v53, %v197_v56 }
  0x3e   :  { %346 = vmatpush.xpose.msk.msra.mxu0 %vm79_vm0, %v220_v47 }
  0x3f   :  { %v140_v62 = vadd.f32 %v139_v55, %v138_v57  ;;  %v201_v1 = vadd.f32 %v200_v58, %v199_v61 }
  0x41   :  { %v142_v2 = vadd.f32 %v141_v60, %v140_v62  ;;  %v203_v5 = vadd.f32 %v202_v63, %v201_v1 }
  0x43   :  { %v143_v6 = vrot.slane %v142_v2, 4  ;;  %v205_v9 = vadd.f32 %v204_v3, %v203_v5 }
  0x45   :  { %v144_v10 = vadd.f32 %v143_v6, %v142_v2  ;;  %v207_v12 = vadd.f32 %v206_v7, %v205_v9 }
  0x47   :  { %v145_v13 = vrot.slane %v144_v10, 2  ;;  %v209_v15 = vadd.f32 %v208_v11, %v207_v12 }
  0x49   :  { %v146_v16 = vadd.f32 %v145_v13, %v144_v10  ;;  %v211_v17 = vadd.f32 %v210_v14, %v209_v15 }
  0x4b   :  { %v212_v18 = vrot.slane %v211_v17, 4  ;;  %v147_v19 = vrot.slane %v146_v16, 1 }
  0x4d   :  { %v213_v20 = vadd.f32 %v212_v18, %v211_v17  ;;  %v148_v22 = vadd.f32 %v147_v19, %v146_v16 }
  0x4f   :  { %v214_v21 = vrot.slane %v213_v20, 2  ;;  %v218_v26 = vmul.f32 0.00390625, %v148_v22 }
  0x51   :  { %v215_v23 = vadd.f32 %v214_v21, %v213_v20 }
  0x53   :  { %v216_v24 = vrot.slane %v215_v23, 1 }
  0x55   :  { %v217_v25 = vadd.f32 %v216_v24, %v215_v23 }
  0x57   :  { %v219_v27 = vmul.f32 0.00390625, %v217_v25 }
  0x59   :  { %v243_v28 = vsel %vm242_vm1, %v219_v27, %v218_v26 }
  0x5a   :  { %347 = vmatmul.msk.f32.vlgmr.msra.gmra.mxu0 %vm79_vm0, %v243_v28 }
  0xd7   :  { %v311_v30 = vpop.f32.mrf.mxu0 }
  0xd8   :  { %v312_v31 = vadd.f32 %v349_v29, %v311_v30 }
  0xda   :  { %314 = vst [vmem:[#allocation2] sm:$0x3] %v312_v31 }
  0xdb   :  { %325 = dma.vmem_to_hbm [thread:$0]  %s321_s11, 32, %s323_s14, [#allocation3]  }
  0xdc   :  { %374 = dma.done.wait [#allocation3], 32  }
  0xdd   :  { %375 = vsyncadd [#allocation3], 4294967264 }
  0xde   :  { %330 = vsyncpa [#allocation3], 1 }

</bundles_post_ra>
